<compile_context>
chip_gen: v5e
topology: v5e:2x2
jax: 0.10.0
libtpu: 0.0.40
codegen_flags: <defaults>
</compile_context>

<pallas_src>
import functools
import math

import jax
import jax.numpy as jnp
from jax.experimental import pallas as pl
from jax.experimental.pallas import tpu as pltpu

_SQRT2 = math.sqrt(2.0)


# ----------------------------- kernel bodies --------------------------------
def _gelu_exact(x):
    # 0.5 * x * (1 + erf(x / sqrt(2)))  -- matches the PyTorch reference gelu()
    return 0.5 * x * (1.0 + jax.lax.erf(x / _SQRT2))


def _activate(h, gelu_activation):
    return _gelu_exact(h) if gelu_activation else jnp.maximum(h, 0.0)


def ffn_kernel_fused(x_ref, w1_ref, b1_ref, w2_ref, b2_ref, o_ref,
                     *, gelu_activation=True):
    """Weights fully resident in VMEM: one step per token tile, no reduction axis."""
    h = jnp.dot(x_ref[...], w1_ref[...], preferred_element_type=jnp.float32)
    h = h + b1_ref[...].astype(jnp.float32)
    h = _activate(h, gelu_activation)
    # dropout: identity in eval/inference mode (nothing to do)
    out = jnp.dot(h.astype(w2_ref.dtype), w2_ref[...],
                  preferred_element_type=jnp.float32)
    o_ref[...] = (out + b2_ref[...].astype(jnp.float32)).astype(o_ref.dtype)


def ffn_kernel_tiled(x_ref, w1_ref, b1_ref, w2_ref, b2_ref, o_ref, acc_ref,
                     *, gelu_activation=True):
    """Hidden dimension streamed as a reduction grid axis (num_k >= 2)."""
    k = pl.program_id(1)
    last = pl.num_programs(1) - 1

    h = jnp.dot(x_ref[...], w1_ref[...], preferred_element_type=jnp.float32)
    h = h + b1_ref[...].astype(jnp.float32)
    h = _activate(h, gelu_activation)
    # dropout: identity in eval/inference mode (nothing to do)
    partial = jnp.dot(h.astype(w2_ref.dtype), w2_ref[...],
                      preferred_element_type=jnp.float32)

    @pl.when(k == 0)
    def _():
        acc_ref[...] = partial            # first block: no zero-init + add

    @pl.when(jnp.logical_and(k > 0, k < last))
    def _():
        acc_ref[...] += partial

    @pl.when(k == last)                   # epilogue fused with last partial
    def _():
        o_ref[...] = (acc_ref[...] + partial
                      + b2_ref[...].astype(jnp.float32)).astype(o_ref.dtype)


# ----------------------------- tiling helpers --------------------------------
def _round_up(x, m):
    return ((x + m - 1) // m) * m


def _pad_to(arr, shape):
    pads = [(0, t - s) for s, t in zip(arr.shape, shape)]
    if all(p == (0, 0) for p in pads):
        return arr
    return jnp.pad(arr, pads)


def _sublane_multiple(dtype):
    # f32 -> 8, bf16 -> 16, int8/fp8 -> 32 (packed-sublane tile heights)
    return max(8, 32 // jnp.dtype(dtype).itemsize)


def _vmem_capacity_bytes():
    try:
        cap = int(getattr(pltpu.get_tpu_info(), "vmem_capacity_bytes", 0))
        if cap > 0:
            return cap
    except Exception:
        pass
    return 64 * 1024 * 1024   # conservative default (v7x per-TensorCore)


def _footprint_bytes(tm, tk, in_p, out_p, x_bytes, w_bytes, out_bytes, tiled):
    """Approximate VMEM bytes for one grid step incl. double buffers + temps."""
    fp = 0
    fp += 2 * tm * in_p * x_bytes          # x blocks (double buffered)
    fp += 2 * tm * out_p * out_bytes       # output blocks
    fp += 2 * in_p * tk * w_bytes          # W1 blocks
    fp += 2 * tk * out_p * w_bytes         # W2 blocks
    fp += 2 * 8 * tk * 4                   # b1 blocks (f32, sublane padded)
    fp += 2 * 8 * out_p * 4                # b2 blocks
    fp += tm * tk * (4 + 4 + w_bytes)      # h (f32) + activation temp + cast
    fp += tm * out_p * 4                   # second-matmul partial (f32)
    if tiled:
        fp += tm * out_p * 4               # f32 accumulator scratch
    return fp


def _choose_tiles(n_tokens, in_p, hid128, out_p, x_bytes, w_bytes, out_bytes,
                  sublane, budget, tm=None, tk=None):
    n_cap = _round_up(max(n_tokens, 1), sublane)

    # explicit override (testing / hand-tuning)
    if tm is not None or tk is not None:
        tm_eff = min(_round_up(tm if tm is not None else 512, sublane), n_cap)
        tk_eff = _round_up(min(tk, hid128) if tk is not None else hid128, 128)
        return tm_eff, tk_eff

    tm_cands = sorted({min(_round_up(t, sublane), n_cap)
                       for t in (1024, 768, 640, 512, 384, 256, 128, 64, 32, 16, 8)},
                      reverse=True)

    # (1) weights fully resident -> a single HBM read of W1/W2 for the grid
    min_res_tm = min(256, n_cap)
    for tm_c in tm_cands:
        if tm_c < min_res_tm:
            break
        if _footprint_bytes(tm_c, hid128, in_p, out_p, x_bytes, w_bytes,
                            out_bytes, tiled=False) <= budget:
            return tm_c, hid128

    # (2) stream weights along a hidden-reduction axis; arithmetic intensity
    #     per weight byte == tm, so prefer the largest tm, then the largest tk.
    tk_cands = sorted({min(t, hid128) for t in (4096, 2048, 1024, 512, 256, 128)},
                      reverse=True)
    for tm_c in tm_cands:
        for tk_c in tk_cands:
            if _footprint_bytes(tm_c, tk_c, in_p, out_p, x_bytes, w_bytes,
                                out_bytes, tiled=True) <= budget:
                return tm_c, tk_c

    # (3) last resort: minimal legal tiles
    return min(sublane, n_cap), 128


# ------------------------------ public wrapper -------------------------------
def transformer_ffn(x, w1, b1, w2, b2, *, gelu_activation=True,
                    compute_dtype=jnp.bfloat16, tm=None, tk=None,
                    interpret=False):
    """Fused TransformerFFN forward (inference).

    x : (N, in_dim)         tokens (batch*seq flattened)
    w1: (in_dim, hidden)    lin1.weight, pre-transposed
    b1: (1, hidden)
    w2: (hidden, out_dim)   lin2.weight, pre-transposed
    b2: (1, out_dim)

    compute_dtype: MXU dtype for x/W1/W2 (bf16 by default; accumulation is f32).
    Output keeps x.dtype.
    """
    N, in_dim = x.shape
    hidden, out_dim = w2.shape
    assert w1.shape == (in_dim, hidden)

    out_dtype = x.dtype
    cd = jnp.dtype(compute_dtype)

    # force the compute dtype (bf16 by default) in the wrapper; biases stay f32
    xw = x.astype(cd)
    w1c = w1.astype(cd)
    w2c = w2.astype(cd)
    b1c = b1.reshape(1, hidden).astype(jnp.float32)
    b2c = b2.reshape(1, out_dim).astype(jnp.float32)

    sublane = max(_sublane_multiple(cd), _sublane_multiple(out_dtype))
    in_p = _round_up(in_dim, 128)
    out_p = _round_up(out_dim, 128)
    hid128 = _round_up(hidden, 128)

    cap = _vmem_capacity_bytes()
    budget = int(cap * 0.72)                      # ~28% headroom for the compiler

    x_bytes = cd.itemsize
    w_bytes = cd.itemsize
    out_bytes = jnp.dtype(out_dtype).itemsize

    tm_eff, tk_eff = _choose_tiles(N, in_p, hid128, out_p, x_bytes, w_bytes,
                                   out_bytes, sublane, budget, tm=tm, tk=tk)
    hid_p = _round_up(hidden, tk_eff)
    num_k = hid_p // tk_eff
    n_p = _round_up(N, tm_eff)
    tiled = num_k > 1

    fp = _footprint_bytes(tm_eff, tk_eff, in_p, out_p, x_bytes, w_bytes,
                          out_bytes, tiled)
    vmem_limit = int(min(cap * 0.94, max(fp * 1.4 + (4 << 20), 32 << 20)))

    xp = _pad_to(xw, (n_p, in_p))
    w1p = _pad_to(w1c, (in_p, hid_p))
    b1p = _pad_to(b1c, (1, hid_p))
    w2p = _pad_to(w2c, (hid_p, out_p))
    b2p = _pad_to(b2c, (1, out_p))

    if not tiled:
        # Weights resident in VMEM: 1-D grid over token tiles, constant weight
        # index_map => W1/W2 DMA'd from HBM exactly once.
        grid = (n_p // tm_eff,)
        kernel = functools.partial(ffn_kernel_fused,
                                   gelu_activation=gelu_activation)
        in_specs = [
            pl.BlockSpec((tm_eff, in_p), lambda i: (i, 0)),
            pl.BlockSpec((in_p, hid_p), lambda i: (0, 0)),
            pl.BlockSpec((1, hid_p), lambda i: (0, 0)),
            pl.BlockSpec((hid_p, out_p), lambda i: (0, 0)),
            pl.BlockSpec((1, out_p), lambda i: (0, 0)),
        ]
        out_specs = pl.BlockSpec((tm_eff, out_p), lambda i: (i, 0))
        scratch = ()
        dims = ("parallel",)
    else:
        # Hidden dimension streamed as an "arbitrary" reduction axis.
        grid = (n_p // tm_eff, num_k)
        kernel = functools.partial(ffn_kernel_tiled,
                                   gelu_activation=gelu_activation)
        in_specs = [
            pl.BlockSpec((tm_eff, in_p), lambda i, k: (i, 0)),
            pl.BlockSpec((in_p, tk_eff), lambda i, k: (0, k)),
            pl.BlockSpec((1, tk_eff), lambda i, k: (0, k)),
            pl.BlockSpec((tk_eff, out_p), lambda i, k: (k, 0)),
            pl.BlockSpec((1, out_p), lambda i, k: (0, 0)),
        ]
        out_specs = pl.BlockSpec((tm_eff, out_p), lambda i, k: (i, 0))
        scratch = (pltpu.VMEM((tm_eff, out_p), jnp.float32),)
        dims = ("parallel", "arbitrary")

    out_padded = pl.pallas_call(
        kernel,
        out_shape=jax.ShapeDtypeStruct((n_p, out_p), out_dtype),
        grid_spec=pltpu.PrefetchScalarGridSpec(
            num_scalar_prefetch=0,
            grid=grid,
            in_specs=in_specs,
            out_specs=out_specs,
            scratch_shapes=scratch,
        ),
        compiler_params=pltpu.CompilerParams(
            dimension_semantics=dims,
            vmem_limit_bytes=vmem_limit,
        ),
        interpret=interpret,
    )(xp, w1p, b1p, w2p, b2p)

    return out_padded[:N, :out_dim]


# ----------------------------- init / reference ------------------------------
def xavier_uniform(key, fan_in, fan_out, dtype=jnp.float32):
    bound = math.sqrt(6.0 / (fan_in + fan_out))
    # PyTorch nn.Linear weight is (out, in); stored transposed as (in, out)
    return jax.random.uniform(key, (fan_in, fan_out), dtype, -bound, bound)


def linear_bias(key, fan_in, fan_out, dtype=jnp.float32):
    bound = 1.0 / math.sqrt(fan_in)
    return jax.random.uniform(key, (1, fan_out), dtype, -bound, bound)


def _reference_ffn(x, w1, b1, w2, b2, gelu_activation=True, cast=None):
    if cast is not None:
        up = lambda a: a.astype(cast).astype(jnp.float32)
        x, w1, w2 = up(x), up(w1), up(w2)
    h = jnp.dot(x, w1, precision="highest") + b1
    h = _gelu_exact(h) if gelu_activation else jnp.maximum(h, 0.0)
    if cast is not None:
        h = h.astype(cast).astype(jnp.float32)
    return jnp.dot(h, w2, precision="highest") + b2


# ----------------------------------- main ------------------------------------
if __name__ == "__main__":
    # --- check 1: small shapes of the module's forward (resident-weight path)
    in_dim, dim_hidden, out_dim = 16, 32, 16
    dropout_p = 0.1           # identity at inference
    gelu_activation = True
    B, S = 2, 8               # batch=2, seq=8 -> 16 tokens

    key = jax.random.PRNGKey(0)
    k_x, k_w1, k_b1, k_w2, k_b2 = jax.random.split(key, 5)

    x = jax.random.normal(k_x, (B, S, in_dim), jnp.float32)
    w1 = xavier_uniform(k_w1, in_dim, dim_hidden)
    b1 = linear_bias(k_b1, in_dim, dim_hidden)
    w2 = xavier_uniform(k_w2, dim_hidden, out_dim)
    b2 = linear_bias(k_b2, dim_hidden, out_dim)

    x_flat = x.reshape(B * S, in_dim)
    out_flat = transformer_ffn(x_flat, w1, b1, w2, b2,
                               gelu_activation=gelu_activation,
                               compute_dtype=jnp.float32)
    out = out_flat.reshape(B, S, out_dim)
    jax.block_until_ready(out)

    ref = _reference_ffn(x_flat, w1, b1, w2, b2).reshape(B, S, out_dim)
    assert jnp.allclose(out, ref, atol=1e-2, rtol=1e-2), "mismatch (fused path)"

    # --- check 2: ragged shapes, forced hidden-reduction (tiled) path, f32
    kb = jax.random.split(jax.random.PRNGKey(1), 5)
    N2, in2, hid2, out2 = 500, 200, 1000, 320
    x2 = jax.random.normal(kb[0], (N2, in2), jnp.float32)
    w1b = xavier_uniform(kb[1], in2, hid2)
    b1b = linear_bias(kb[2], in2, hid2)
    w2b = xavier_uniform(kb[3], hid2, out2)
    b2b = linear_bias(kb[4], hid2, out2)

    out2_k = transformer_ffn(x2, w1b, b1b, w2b, b2b,
                             compute_dtype=jnp.float32, tm=128, tk=256)
    jax.block_until_ready(out2_k)
    ref2 = _reference_ffn(x2, w1b, b1b, w2b, b2b)
    assert jnp.allclose(out2_k, ref2, atol=2e-2, rtol=2e-2), \
        "mismatch (tiled path)"

    # --- check 3: default bf16 compute path with auto tile selection
    kc = jax.random.split(jax.random.PRNGKey(2), 5)
    N3, in3, hid3, out3 = 640, 256, 512, 256
    x3 = jax.random.normal(kc[0], (N3, in3), jnp.float32)
    w1c_ = xavier_uniform(kc[1], in3, hid3)
    b1c_ = linear_bias(kc[2], in3, hid3)
    w2c_ = xavier_uniform(kc[3], hid3, out3)
    b2c_ = linear_bias(kc[4], hid3, out3)

    out3_k = transformer_ffn(x3, w1c_, b1c_, w2c_, b2c_)     # bf16 default
    jax.block_until_ready(out3_k)
    ref3 = _reference_ffn(x3, w1c_, b1c_, w2c_, b2c_, cast=jnp.bfloat16)
    assert jnp.allclose(out3_k, ref3, atol=3e-2, rtol=3e-2), \
        "mismatch (bf16 path)"

    print("KERNEL_OK")
</pallas_src>

<mosaic_0001>
module attributes {stable_mosaic.version = 11 : i64} {
  func.func @ffn_kernel_fused(%arg0: i32, %arg1: memref<16x128xf32, #tpu.memory_space<vmem>>, %arg2: memref<128x128xf32, #tpu.memory_space<vmem>>, %arg3: memref<1x128xf32, #tpu.memory_space<vmem>>, %arg4: memref<128x128xf32, #tpu.memory_space<vmem>>, %arg5: memref<1x128xf32, #tpu.memory_space<vmem>>, %arg6: memref<16x128xf32, #tpu.memory_space<vmem>>) attributes {dimension_semantics = [#tpu.dimension_semantics<parallel>], iteration_bounds = array<i64: 1>, scalar_prefetch = 0 : i64, scratch_operands = 0 : i64, tpu.core_type = #tpu.core_type<tc>, window_params = [{transform_indices = @transform_0, window_bounds = array<i64: 16, 128>}, {pipeline_mode = #tpu.pipeline_mode<synchronous>, transform_indices = @transform_1, window_bounds = array<i64: 128, 128>}, {pipeline_mode = #tpu.pipeline_mode<synchronous>, transform_indices = @transform_2, window_bounds = array<i64: 1, 128>}, {pipeline_mode = #tpu.pipeline_mode<synchronous>, transform_indices = @transform_3, window_bounds = array<i64: 128, 128>}, {pipeline_mode = #tpu.pipeline_mode<synchronous>, transform_indices = @transform_4, window_bounds = array<i64: 1, 128>}, {transform_indices = @transform_5, window_bounds = array<i64: 16, 128>}]} {
    %c0 = arith.constant 0 : index
    %c0_0 = arith.constant 0 : index
    %0 = vector.load %arg1[%c0, %c0_0] : memref<16x128xf32, #tpu.memory_space<vmem>>, vector<16x128xf32>
    %c0_1 = arith.constant 0 : index
    %c0_2 = arith.constant 0 : index
    %1 = vector.load %arg2[%c0_1, %c0_2] : memref<128x128xf32, #tpu.memory_space<vmem>>, vector<128x128xf32>
    %cst = arith.constant dense<0.000000e+00> : vector<16x128xf32>
    %2 = tpu.matmul %0, %1, %cst {dimension_numbers = #tpu.dot_dimension_numbers<[1], [0], [0], [1], [0, 0, 1, 1], [], []>} : vector<16x128xf32>, vector<128x128xf32>, vector<16x128xf32> -> vector<16x128xf32>
    %c0_3 = arith.constant 0 : index
    %c0_4 = arith.constant 0 : index
    %3 = vector.load %arg3[%c0_3, %c0_4] : memref<1x128xf32, #tpu.memory_space<vmem>>, vector<1x128xf32>
    %4 = vector.broadcast %3 : vector<1x128xf32> to vector<16x128xf32>
    %5 = arith.addf %2, %4 : vector<16x128xf32>
    %cst_5 = arith.constant 5.000000e-01 : f32
    %6 = vector.broadcast %cst_5 : f32 to vector<16x128xf32>
    %7 = arith.mulf %6, %5 : vector<16x128xf32>
    %cst_6 = arith.constant 1.41421354 : f32
    %8 = vector.broadcast %cst_6 : f32 to vector<16x128xf32>
    %9 = arith.divf %5, %8 : vector<16x128xf32>
    %10 = math.erf %9 : vector<16x128xf32>
    %cst_7 = arith.constant 1.000000e+00 : f32
    %11 = vector.broadcast %cst_7 : f32 to vector<16x128xf32>
    %12 = arith.addf %11, %10 : vector<16x128xf32>
    %13 = arith.mulf %7, %12 : vector<16x128xf32>
    %c0_8 = arith.constant 0 : index
    %c0_9 = arith.constant 0 : index
    %14 = vector.load %arg4[%c0_8, %c0_9] : memref<128x128xf32, #tpu.memory_space<vmem>>, vector<128x128xf32>
    %cst_10 = arith.constant dense<0.000000e+00> : vector<16x128xf32>
    %15 = tpu.matmul %13, %14, %cst_10 {dimension_numbers = #tpu.dot_dimension_numbers<[1], [0], [0], [1], [0, 0, 1, 1], [], []>} : vector<16x128xf32>, vector<128x128xf32>, vector<16x128xf32> -> vector<16x128xf32>
    %c0_11 = arith.constant 0 : index
    %c0_12 = arith.constant 0 : index
    %16 = vector.load %arg5[%c0_11, %c0_12] : memref<1x128xf32, #tpu.memory_space<vmem>>, vector<1x128xf32>
    %17 = vector.broadcast %16 : vector<1x128xf32> to vector<16x128xf32>
    %18 = arith.addf %15, %17 : vector<16x128xf32>
    %c0_13 = arith.constant 0 : index
    %c0_14 = arith.constant 0 : index
    %19 = vector.load %arg6[%c0_13, %c0_14] : memref<16x128xf32, #tpu.memory_space<vmem>>, vector<16x128xf32>
    tpu.vector_store %arg6[%c0_13, %c0_14], %18 {strides = array<i32>} : memref<16x128xf32, #tpu.memory_space<vmem>>, vector<16x128xf32>,
    return
  }
  func.func @transform_0(%arg0: i32) -> (i32, i32) {
    %c0_i32 = arith.constant 0 : i32
    %c0_i32_0 = arith.constant 0 : i32
    return %arg0, %c0_i32 : i32, i32
  }
  func.func @transform_1(%arg0: i32) -> (i32, i32) {
    %c0_i32 = arith.constant 0 : i32
    %c0_i32_0 = arith.constant 0 : i32
    %c0_i32_1 = arith.constant 0 : i32
    return %c0_i32, %c0_i32_0 : i32, i32
  }
  func.func @transform_2(%arg0: i32) -> (i32, i32) {
    %c0_i32 = arith.constant 0 : i32
    %c0_i32_0 = arith.constant 0 : i32
    %c0_i32_1 = arith.constant 0 : i32
    return %c0_i32, %c0_i32_0 : i32, i32
  }
  func.func @transform_3(%arg0: i32) -> (i32, i32) {
    %c0_i32 = arith.constant 0 : i32
    %c0_i32_0 = arith.constant 0 : i32
    %c0_i32_1 = arith.constant 0 : i32
    return %c0_i32, %c0_i32_0 : i32, i32
  }
  func.func @transform_4(%arg0: i32) -> (i32, i32) {
    %c0_i32 = arith.constant 0 : i32
    %c0_i32_0 = arith.constant 0 : i32
    %c0_i32_1 = arith.constant 0 : i32
    return %c0_i32, %c0_i32_0 : i32, i32
  }
  func.func @transform_5(%arg0: i32) -> (i32, i32) {
    %c0_i32 = arith.constant 0 : i32
    %c0_i32_0 = arith.constant 0 : i32
    return %arg0, %c0_i32 : i32, i32
  }
}

</mosaic_0001>

<bundles_post_ra>
// kernel: tpu_custom_call.1
= control target key start
LH: loop header
LB: loop body
LE: loop exit
PB: predicated region body
PF: predicated region fallthrough
CT: control target
= control target key end

     0   :  { %10 = vsyncpa [#allocation3], 0  ;;  %s521_s0 = inlined_call_operand.hbm [shape: f32[16,128], index: 0, kind: input, shape index: {}]   ;;  %s522_s1 = inlined_call_operand.hbm [shape: f32[128,128], index: 1, kind: input, shape index: {}]   ;;  %s523_s2 = inlined_call_operand.vmem [shape: f32[1,128], index: 2, kind: input, shape index: {}]   ;;  %s524_s3 = inlined_call_operand.hbm [shape: f32[128,128], index: 3, kind: input, shape index: {}]   ;;  %s525_s4 = inlined_call_operand.vmem [shape: f32[1,128], index: 4, kind: input, shape index: {}]   ;;  %s526_s5 = inlined_call_operand.hbm [shape: f32[16,128], index: 5, kind: output, shape index: {}]  }
   0x1   :  { %11 = vsyncpa [#allocation6], 0 }
   0x2   :  { %12 = vsyncpa [#allocation4], 0  ;;  %s30_s20 = sshll.u32 %s522_s1, 4  ;;  %s424_s21 = smov [#allocation5]   ;;  %s31_s20 = int_to_ptr.hbm [resolvable:$true] %s30_s20 }
   0x3   :  { %s32_s22 = sshll.u32 %s424_s21, 4  ;;  %s17_s25 = sshll.u32 %s521_s0, 4  ;;  %s33_s22 = int_to_ptr.vmem [resolvable:$true] %s32_s22  ;;  %s18_s25 = int_to_ptr.hbm [resolvable:$true] %s17_s25 }
   0x4   :  { %s425_s26 = smov 128   ;;  %s426_s27 = smov 8  }
   0x5   :  { %38 = dma.hbm_to_vmem [thread:$0]  %s31_s20, 2048, %s33_s22, [#allocation6], %s425_s26, %s425_s26, %s426_s27  }
   0x6   :  { %s427_s28 = smov [#allocation2]   ;;  %s45_s1 = sshll.u32 %s524_s3, 4  ;;  %s46_s1 = int_to_ptr.hbm [resolvable:$true] %s45_s1 }
   0x7   :  { %s19_s29 = sshll.u32 %s427_s28, 4  ;;  %s428_s0 = smov [#allocation7]   ;;  %s20_s29 = int_to_ptr.vmem [resolvable:$true] %s19_s29 }
   0x8   :  { %25 = dma.hbm_to_vmem [thread:$0]  %s18_s25, 256, %s20_s29, [#allocation3], %s425_s26, %s425_s26, %s426_s27  }
   0x9   :  { %s47_s7 = sshll.u32 %s428_s0, 4  ;;  %s48_s7 = int_to_ptr.vmem [resolvable:$true] %s47_s7 }
   0xa   :  { %53 = dma.hbm_to_vmem [thread:$0]  %s46_s1, 2048, %s48_s7, [#allocation6], %s425_s26, %s425_s26, %s426_s27  }
   0xb   :  { %418 = dma.done.wait [#allocation3], 256  }
   0xc   :  { %419 = vsyncadd [#allocation3], 4294967040 }
   0xd   :  { %420 = dma.done.wait [#allocation6], 4096  }
   0xe   :  { %421 = vsyncadd [#allocation6], 4294963200  ;;  %v85_v0 = vld [vmem:[#allocation5 + $0x78] sm:$0xff]  ;;  %v84_v1 = vld [vmem:[#allocation5 + $0x70] sm:$0xff]  ;;  %v429_v18 = vmov 1.4142135  }
   0xf   :  { %90 = vmatpush.msra.mxu0 %v85_v0  ;;  %275 = vmatpush.msra.mxu2 %v85_v0  ;;  %v83_v2 = vld [vmem:[#allocation5 + $0x68] sm:$0xff]  ;;  %v82_v3 = vld [vmem:[#allocation5 + $0x60] sm:$0xff]  ;;  %v81_v4 = vld [vmem:[#allocation5 + $0x58] sm:$0xff]  ;;  %316 = vrcp.f32 %v429_v18  ;;  %s430_s10 = smov [#allocation8]   ;;  %s259_s14 = sshll.u32 %s526_s5, 4  ;;  %s260_s14 = int_to_ptr.hbm [resolvable:$true] %s259_s14 }
  0x10   :  { %v80_v5 = vld [vmem:[#allocation5 + $0x50] sm:$0xff]  ;;  %v79_v6 = vld [vmem:[#allocation5 + $0x48] sm:$0xff]  ;;  %v78_v7 = vld [vmem:[#allocation5 + $0x40] sm:$0xff]  ;;  %s257_s11 = sshll.u32 %s430_s10, 4  ;;  %s258_s11 = int_to_ptr.vmem [resolvable:$true] %s257_s11 }
  0x11   :  { %91 = vmatpush.msra.mxu0 %v84_v1  ;;  %276 = vmatpush.msra.mxu2 %v84_v1  ;;  %v77_v8 = vld [vmem:[#allocation5 + $0x38] sm:$0xff]  ;;  %v76_v9 = vld [vmem:[#allocation5 + $0x30] sm:$0xff]  ;;  %v75_v10 = vld [vmem:[#allocation5 + $0x28] sm:$0xff] }
  0x12   :  { %v74_v11 = vld [vmem:[#allocation5 + $0x20] sm:$0xff]  ;;  %v73_v12 = vld [vmem:[#allocation5 + $0x18] sm:$0xff]  ;;  %v72_v13 = vld [vmem:[#allocation5 + $0x10] sm:$0xff] }
  0x13   :  { %92 = vmatpush.msra.mxu0 %v83_v2  ;;  %277 = vmatpush.msra.mxu2 %v83_v2  ;;  %v71_v14 = vld [vmem:[#allocation5 + $0x8] sm:$0xff]  ;;  %v70_v15 = vld [vmem:[#allocation5] sm:$0xff]  ;;  %v68_v16 = vld [vmem:[#allocation2] sm:$0xff] }
  0x14   :  { %v69_v17 = vld [vmem:[#allocation2 + $0x8] sm:$0xff]  ;;  %v222_v24 = vld [vmem:[#allocation7 + $0x70] sm:$0xff]  ;;  %v221_v25 = vld [vmem:[#allocation7 + $0x68] sm:$0xff] }
  0x15   :  { %93 = vmatpush.msra.mxu0 %v82_v3  ;;  %278 = vmatpush.msra.mxu2 %v82_v3  ;;  %v317_v19 = vpop.eup %316  ;;  %v223_v22 = vld [vmem:[#allocation7 + $0x78] sm:$0xff]  ;;  %v220_v27 = vld [vmem:[#allocation7 + $0x60] sm:$0xff]  ;;  %v314_v28 = vld [vmem:[%s523_s2] ss:$0 sm:$0xff] }
  0x16   :  { %v116_v20 = vmul.f32 1.4142135, %v317_v19  ;;  %228 = vmatpush.msra.mxu1 %v223_v22  ;;  %291 = vmatpush.msra.mxu3 %v223_v22  ;;  %vm120_vm0 = vweird.f32 %v317_v19  ;;  %v219_v29 = vld [vmem:[#allocation7 + $0x58] sm:$0xff]  ;;  %v218_v32 = vld [vmem:[#allocation7 + $0x50] sm:$0xff]  ;;  %v217_v34 = vld [vmem:[#allocation7 + $0x48] sm:$0xff] }
  0x17   :  { %94 = vmatpush.msra.mxu0 %v81_v4  ;;  %279 = vmatpush.msra.mxu2 %v81_v4  ;;  %v216_v36 = vld [vmem:[#allocation7 + $0x40] sm:$0xff]  ;;  %v215_v37 = vld [vmem:[#allocation7 + $0x38] sm:$0xff]  ;;  %v214_v40 = vld [vmem:[#allocation7 + $0x30] sm:$0xff] }
  0x18   :  { %v117_v21 = vsub.f32 1.0, %v116_v20  ;;  %229 = vmatpush.msra.mxu1 %v222_v24  ;;  %292 = vmatpush.msra.mxu3 %v222_v24  ;;  %v213_v43 = vld [vmem:[#allocation7 + $0x28] sm:$0xff]  ;;  %v212_v47 = vld [vmem:[#allocation7 + $0x20] sm:$0xff]  ;;  %v211_v51 = vld [vmem:[#allocation7 + $0x18] sm:$0xff] }
  0x19   :  { %95 = vmatpush.msra.mxu0 %v80_v5  ;;  %280 = vmatpush.msra.mxu2 %v80_v5  ;;  %v210_v55 = vld [vmem:[#allocation7 + $0x10] sm:$0xff]  ;;  %v209_v59 = vld [vmem:[#allocation7 + $0x8] sm:$0xff]  ;;  %v208_v63 = vld [vmem:[#allocation7] sm:$0xff] }
  0x1a   :  { %v118_v23 = vmul.f32 %v317_v19, %v117_v21  ;;  %230 = vmatpush.msra.mxu1 %v221_v25  ;;  %293 = vmatpush.msra.mxu3 %v221_v25 }
  0x1b   :  { %96 = vmatpush.msra.mxu0 %v79_v6  ;;  %281 = vmatpush.msra.mxu2 %v79_v6 }
  0x1c   :  { %v119_v26 = vadd.f32 %v317_v19, %v118_v23  ;;  %231 = vmatpush.msra.mxu1 %v220_v27  ;;  %294 = vmatpush.msra.mxu3 %v220_v27 }
  0x1d   :  { %97 = vmatpush.msra.mxu0 %v78_v7  ;;  %282 = vmatpush.msra.mxu2 %v78_v7 }
  0x1e   :  { %232 = vmatpush.msra.mxu1 %v219_v29  ;;  %295 = vmatpush.msra.mxu3 %v219_v29  ;;  %v121_v31 = vsel %vm120_vm0, %v317_v19, %v119_v26 }
  0x1f   :  { %98 = vmatpush.msra.mxu0 %v77_v8  ;;  %283 = vmatpush.msra.mxu2 %v77_v8 }
  0x20   :  { %233 = vmatpush.msra.mxu1 %v218_v32  ;;  %296 = vmatpush.msra.mxu3 %v218_v32 }
  0x21   :  { %99 = vmatpush.msra.mxu0 %v76_v9  ;;  %284 = vmatpush.msra.mxu2 %v76_v9 }
  0x22   :  { %234 = vmatpush.msra.mxu1 %v217_v34  ;;  %297 = vmatpush.msra.mxu3 %v217_v34 }
  0x23   :  { %100 = vmatpush.msra.mxu0 %v75_v10  ;;  %285 = vmatpush.msra.mxu2 %v75_v10 }
  0x24   :  { %235 = vmatpush.msra.mxu1 %v216_v36  ;;  %298 = vmatpush.msra.mxu3 %v216_v36 }
  0x25   :  { %101 = vmatpush.msra.mxu0 %v74_v11  ;;  %286 = vmatpush.msra.mxu2 %v74_v11 }
  0x26   :  { %236 = vmatpush.msra.mxu1 %v215_v37  ;;  %299 = vmatpush.msra.mxu3 %v215_v37 }
  0x27   :  { %102 = vmatpush.msra.mxu0 %v73_v12  ;;  %287 = vmatpush.msra.mxu2 %v73_v12 }
  0x28   :  { %237 = vmatpush.msra.mxu1 %v214_v40  ;;  %300 = vmatpush.msra.mxu3 %v214_v40 }
  0x29   :  { %103 = vmatpush.msra.mxu0 %v72_v13  ;;  %288 = vmatpush.msra.mxu2 %v72_v13 }
  0x2a   :  { %238 = vmatpush.msra.mxu1 %v213_v43  ;;  %301 = vmatpush.msra.mxu3 %v213_v43 }
  0x2b   :  { %104 = vmatpush.msra.mxu0 %v71_v14  ;;  %289 = vmatpush.msra.mxu2 %v71_v14 }
  0x2c   :  { %239 = vmatpush.msra.mxu1 %v212_v47  ;;  %302 = vmatpush.msra.mxu3 %v212_v47 }
  0x2d   :  { %105 = vmatpush.msra.mxu0 %v70_v15  ;;  %290 = vmatpush.msra.mxu2 %v70_v15 }
  0x2e   :  { %106 = vmatmul.f32.vlgmr.msra.gmra.mxu0 %v68_v16  ;;  %109 = vmatmul.f32.vlgmr.msra.gmra.mxu2 %v69_v17 }
  0x2f   :  { %240 = vmatpush.msra.mxu1 %v211_v51  ;;  %303 = vmatpush.msra.mxu3 %v211_v51 }
  0x31   :  { %241 = vmatpush.msra.mxu1 %v210_v55  ;;  %304 = vmatpush.msra.mxu3 %v210_v55 }
  0x33   :  { %242 = vmatpush.msra.mxu1 %v209_v59  ;;  %305 = vmatpush.msra.mxu3 %v209_v59 }
  0x35   :  { %243 = vmatpush.msra.mxu1 %v208_v63  ;;  %306 = vmatpush.msra.mxu3 %v208_v63 }
  0xab   :  { %v107_v30 = vpop.f32.mrf.mxu0 }
  0xac   :  { %v482_v33 = vadd.f32 %v314_v28, %v107_v30 }
  0xae   :  { %v485_v35 = vmul.f32 %v121_v31, %v482_v33 }
  0xb0   :  { %v124_v38 = vmul.f32 %v485_v35, %v485_v35 }
  0xb1   :  { %v110_v39 = vpop.f32.mrf.mxu2 }
  0xb2   :  { %v489_v41 = vmin.f32 %v124_v38, 16.0  ;;  %v491_v42 = vadd.f32 %v314_v28, %v110_v39 }
  0xb4   :  { %v126_v44 = vmul.f32 2.1237322e-06, %v489_v41  ;;  %v495_v45 = vmul.f32 %v121_v31, %v491_v42  ;;  %v137_v46 = vmul.f32 3.8918573e-05, %v489_v41 }
  0xb6   :  { %v127_v48 = vadd.f32 0.00028619796, %v126_v44  ;;  %v164_v49 = vmul.f32 %v495_v45, %v495_v45  ;;  %v138_v50 = vadd.f32 0.001143296, %v137_v46 }
  0xb8   :  { %v128_v52 = vmul.f32 %v127_v48, %v489_v41  ;;  %v165_v53 = vmin.f32 %v164_v49, 16.0  ;;  %v139_v54 = vmul.f32 %v138_v50, %v489_v41 }
  0xba   :  { %v166_v56 = vmul.f32 2.1237322e-06, %v165_v53  ;;  %v140_v57 = vadd.f32 0.014752088, %v139_v54  ;;  %v129_v58 = vadd.f32 0.0036580483, %v128_v52 }
  0xbb   :  { %v177_v60 = vmul.f32 3.8918573e-05, %v165_v53  ;;  %v113_v52 = vmul.f32 0.5, %v482_v33  ;;  %v315_v33 = vld [vmem:[%s525_s4] ss:$0 sm:$0xff] }
  0xbc   :  { %v167_v61 = vadd.f32 0.00028619796, %v166_v56  ;;  %v141_v62 = vmul.f32 %v140_v57, %v489_v41  ;;  %v130_v3 = vmul.f32 %v129_v58, %v489_v41 }
  0xbd   :  { %v178_v0 = vadd.f32 0.001143296, %v177_v60  ;;  %v114_v60 = vmul.f32 0.5, %v491_v42 }
  0xbe   :  { %v168_v1 = vmul.f32 %v167_v61, %v165_v53  ;;  %v142_v2 = vadd.f32 0.112945676, %v141_v62  ;;  %v131_v9 = vadd.f32 0.05243302, %v130_v3 }
  0xbf   :  { %v179_v4 = vmul.f32 %v178_v0, %v165_v53 }
  0xc0   :  { %v143_v5 = vmul.f32 %v142_v2, %v489_v41  ;;  %v169_v7 = vadd.f32 0.0036580483, %v168_v1  ;;  %v132_v15 = vmul.f32 %v131_v9, %v489_v41 }
  0xc1   :  { %v180_v6 = vadd.f32 0.014752088, %v179_v4 }
  0xc2   :  { %v144_v8 = vadd.f32 0.4994258, %v143_v5  ;;  %v170_v13 = vmul.f32 %v169_v7, %v165_v53  ;;  %v133_v19 = vadd.f32 0.18741608, %v132_v15 }
  0xc3   :  { %v181_v10 = vmul.f32 %v180_v6, %v165_v53 }
  0xc4   :  { %v145_v11 = vmul.f32 %v144_v8, %v489_v41  ;;  %v171_v18 = vadd.f32 0.05243302, %v170_v13  ;;  %v134_v24 = vmul.f32 %v133_v19, %v489_v41 }
  0xc5   :  { %v182_v12 = vadd.f32 0.112945676, %v181_v10 }
  0xc6   :  { %v146_v14 = vadd.f32 1.0, %v145_v11  ;;  %v172_v23 = vmul.f32 %v171_v18, %v165_v53  ;;  %v135_v29 = vadd.f32 1.1283791, %v134_v24 }
  0xc7   :  { %v183_v16 = vmul.f32 %v182_v12, %v165_v53 }
  0xc8   :  { %318 = vrcp.f32 %v146_v14  ;;  %v173_v27 = vadd.f32 0.18741608, %v172_v23  ;;  %v158_v28 = vand.u32 2147483648, %v146_v14  ;;  %v156_v31 = vand.u32 2147483647, %v146_v14 }
  0xc9   :  { %v184_v17 = vadd.f32 0.4994258, %v183_v16  ;;  %vm152_vm2 = vweird.f32 %v146_v14  ;;  %v136_v39 = vmul.f32 %v135_v29, %v485_v35 }
  0xca   :  { %v174_v36 = vmul.f32 %v173_v27, %v165_v53  ;;  %v159_v37 = vor.u32 1.1754944e-38, %v158_v28  ;;  %vm157_vm4 = vcmp.eq.f32.partialorder %v156_v31, 8.507059e+37 }
  0xcb   :  { %v185_v20 = vmul.f32 %v184_v17, %v165_v53 }
  0xcc   :  { %v175_v47 = vadd.f32 1.1283791, %v174_v36 }
  0xcd   :  { %v186_v21 = vadd.f32 1.0, %v185_v20 }
  0xce   :  { %v319_v22 = vpop.eup %318  ;;  %v176_v35 = vmul.f32 %v175_v47, %v495_v45 }
  0xcf   :  { %v148_v25 = vmul.f32 %v319_v22, %v146_v14  ;;  %320 = vrcp.f32 %v186_v21  ;;  %vm153_vm1 = vweird.f32 %v319_v22  ;;  %v198_v46 = vand.u32 2147483648, %v186_v21 }
  0xd0   :  { %vm154_vm3 = vmor %vm152_vm2, %vm153_vm1  ;;  %v196_v49 = vand.u32 2147483647, %v186_v21  ;;  %vm192_vm6 = vweird.f32 %v186_v21 }
  0xd1   :  { %v149_v26 = vsub.f32 1.0, %v148_v25  ;;  %v199_v54 = vor.u32 1.1754944e-38, %v198_v46 }
  0xd2   :  { %vm197_vm8 = vcmp.eq.f32.partialorder %v196_v49, 8.507059e+37 }
  0xd3   :  { %v150_v30 = vmul.f32 %v319_v22, %v149_v26 }
  0xd5   :  { %v321_v32 = vpop.eup %320  ;;  %v151_v34 = vadd.f32 %v319_v22, %v150_v30 }
  0xd6   :  { %v188_v38 = vmul.f32 %v321_v32, %v186_v21  ;;  %vm193_vm5 = vweird.f32 %v321_v32 }
  0xd7   :  { %v155_v40 = vsel %vm154_vm3, %v319_v22, %v151_v34  ;;  %vm194_vm7 = vmor %vm192_vm6, %vm193_vm5 }
  0xd8   :  { %v160_v41 = vsel %vm157_vm4, %v159_v37, %v155_v40  ;;  %v189_v43 = vsub.f32 1.0, %v188_v38 }
  0xd9   :  { %v161_v44 = vmul.f32 %v160_v41, %v136_v39 }
  0xda   :  { %v190_v48 = vmul.f32 %v321_v32, %v189_v43 }
  0xdb   :  { %v273_v50 = vclamps-f32 %v161_v44, 1.0 }
  0xdc   :  { %v191_v51 = vadd.f32 %v321_v32, %v190_v48 }
  0xdd   :  { %v204_v53 = vadd.f32 1.0, %v273_v50 }
  0xde   :  { %v195_v55 = vsel %vm194_vm7, %v321_v32, %v191_v51 }
  0xdf   :  { %v206_v56 = vmul.f32 %v204_v53, %v113_v52  ;;  %v200_v57 = vsel %vm197_vm8, %v199_v54, %v195_v55 }
  0xe0   :  { %v201_v58 = vmul.f32 %v200_v57, %v176_v35 }
  0xe1   :  { %244 = vmatmul.f32.vlgmr.msra.gmra.mxu1 %v206_v56 }
  0xe2   :  { %v274_v59 = vclamps-f32 %v201_v58, 1.0 }
  0xe4   :  { %v205_v61 = vadd.f32 1.0, %v274_v59 }
  0xe6   :  { %v207_v62 = vmul.f32 %v205_v61, %v114_v60 }
  0xe8   :  { %247 = vmatmul.f32.vlgmr.msra.gmra.mxu3 %v207_v62 }
 0x15e   :  { %v245_v63 = vpop.f32.mrf.mxu1 }
 0x15f   :  { %v246_v0 = vadd.f32 %v315_v33, %v245_v63 }
 0x161   :  { %251 = vst [vmem:[#allocation8] sm:$0xff] %v246_v0 }
 0x16b   :  { %v248_v45 = vpop.f32.mrf.mxu3 }
 0x16c   :  { %v249_v1 = vadd.f32 %v315_v33, %v248_v45 }
 0x16e   :  { %252 = vst [vmem:[#allocation8 + $0x8] sm:$0xff] %v249_v1 }
 0x16f   :  { %265 = dma.vmem_to_hbm [thread:$0]  %s258_s11, 256, %s260_s14, [#allocation4], %s425_s26, %s425_s26, %s426_s27  }
 0x170   :  { %422 = dma.done.wait [#allocation4], 256  }
 0x171   :  { %423 = vsyncadd [#allocation4], 4294967040 }
 0x172   :  { %270 = vsyncpa [#allocation3], 1 }
 0x173   :  { %271 = vsyncpa [#allocation6], 1 }
 0x174   :  { %272 = vsyncpa [#allocation4], 1 }

</bundles_post_ra>
